<compile_context>
chip_gen: v5e
topology: v5e:2x2
jax: 0.10.0
libtpu: 0.0.40
codegen_flags: <defaults>
</compile_context>

<pallas_src>
import functools

import numpy as np
import jax
import jax.numpy as jnp
from jax.experimental import pallas as pl
from jax.experimental.pallas import tpu as pltpu


# ----------------------------- module glue (plain JAX, tiny) -----------------------------

def init_params(key, feature_dim_list):
    """Parameters of nn.BatchNorm2d(max(feature_dim_list)) (randomized so the test is non-trivial)."""
    max_fd = max(feature_dim_list)
    k1, k2, k3, k4 = jax.random.split(key, 4)
    return dict(
        feature_dim_list=list(feature_dim_list),
        max_feature_dim=max_fd,
        weight=1.0 + 0.1 * jax.random.normal(k1, (max_fd,), jnp.float32),
        bias=0.1 * jax.random.normal(k2, (max_fd,), jnp.float32),
        running_mean=0.1 * jax.random.normal(k3, (max_fd,), jnp.float32),
        running_var=1.0 + 0.1 * jax.random.uniform(k4, (max_fd,), jnp.float32),
        eps=1e-5,
        momentum=0.1,
    )


def get_active_weights_bias(params, out_features):
    """F.pad(bn.weight[:out_features], (0, max_fd - out_features)) — zero channels >= out_features."""
    max_fd = params["max_feature_dim"]
    mask = (jnp.arange(max_fd) < out_features).astype(jnp.float32)
    return params["weight"] * mask, params["bias"] * mask


def get_params_mixture(params, mix_weights, use_argmax=False):
    fdl = params["feature_dim_list"]
    if use_argmax:
        # NOTE: mirrors the reference's numpy .item() argmax; requires concrete weights (eager only).
        idx = int(np.argmax(np.asarray(mix_weights)))
        return get_active_weights_bias(params, fdl[idx])
    gamma = jnp.zeros((params["max_feature_dim"],), jnp.float32)
    beta = jnp.zeros((params["max_feature_dim"],), jnp.float32)
    for i in range(len(fdl)):
        g_i, b_i = get_active_weights_bias(params, fdl[i])
        gamma = gamma + mix_weights[i] * g_i
        beta = beta + mix_weights[i] * b_i
    return gamma, beta


# ----------------------------- block sizing -----------------------------

_TARGET_BLOCK_ELEMS = 512 * 1024   # ~2 MiB of f32 per in / per out block
_LANE_BLOCK_CAP = 2048             # lane-axis (H*W) elements per block, multiple of 128
_ROW_BLOCK_CAP = 2048              # sublane-axis (N*C) rows per block, multiple of 8


def _pick_blocks(n_rows, n_lanes):
    # Lane (last) axis: keep the full extent if small, otherwise a 128-multiple cap.
    hw_blk = n_lanes if n_lanes <= _LANE_BLOCK_CAP else _LANE_BLOCK_CAP
    # Sublane axis: grow rows so the block reaches ~_TARGET_BLOCK_ELEMS, rounded to 8.
    tgt_rows = max(8, _TARGET_BLOCK_ELEMS // max(hw_blk, 1))
    tgt_rows = min((tgt_rows // 8) * 8, _ROW_BLOCK_CAP)
    r_blk = n_rows if n_rows <= tgt_rows else tgt_rows
    return r_blk, hw_blk


# ----------------------------- Pallas kernels -----------------------------

def _bn_apply_kernel(x_ref, scale_ref, shift_ref, o_ref):
    # x_ref/o_ref : (r_blk, hw_blk)  rows = flattened (n, c), lanes = flattened H*W
    # scale_ref/shift_ref : (r_blk, 1)  per-row (i.e. per-channel) affine terms
    x = x_ref[...].astype(jnp.float32)
    o_ref[...] = (x * scale_ref[...] + shift_ref[...]).astype(o_ref.dtype)


def _bn_apply_pallas(x2, scale_rows, shift_rows):
    R, HW = x2.shape
    r_blk, hw_blk = _pick_blocks(R, HW)
    grid = (pl.cdiv(R, r_blk), pl.cdiv(HW, hw_blk))
    return pl.pallas_call(
        _bn_apply_kernel,
        out_shape=jax.ShapeDtypeStruct((R, HW), x2.dtype),
        grid_spec=pltpu.PrefetchScalarGridSpec(
            num_scalar_prefetch=0,
            grid=grid,
            in_specs=[
                pl.BlockSpec((r_blk, hw_blk), lambda r, h: (r, h)),
                pl.BlockSpec((r_blk, 1), lambda r, h: (r, 0)),
                pl.BlockSpec((r_blk, 1), lambda r, h: (r, 0)),
            ],
            out_specs=pl.BlockSpec((r_blk, hw_blk), lambda r, h: (r, h)),
        ),
        compiler_params=pltpu.CompilerParams(
            dimension_semantics=("parallel", "parallel"),
            vmem_limit_bytes=32 * 1024 * 1024,
        ),
    )(x2, scale_rows, shift_rows)


def _bn_stats_kernel(x_ref, sum_ref, sq_ref, *, hw_total, hw_blk, ragged):
    # Per-row sum / sum-of-squares, accumulated across the (last, "arbitrary") HW grid axis.
    h = pl.program_id(1)

    @pl.when(h == 0)
    def _():
        sum_ref[...] = jnp.zeros_like(sum_ref)
        sq_ref[...] = jnp.zeros_like(sq_ref)

    x = x_ref[...].astype(jnp.float32)                            # (r_blk, hw_blk)
    if ragged:  # mask ragged lane edge (OOB reads of the last block are unspecified)
        lane = jax.lax.broadcasted_iota(jnp.int32, x.shape, 1)
        x = jnp.where(h * hw_blk + lane < hw_total, x, 0.0)
    sum_ref[...] += jnp.sum(x, axis=1, keepdims=True)
    sq_ref[...] += jnp.sum(x * x, axis=1, keepdims=True)


def _bn_stats_pallas(x2):
    R, HW = x2.shape
    r_blk, hw_blk = _pick_blocks(R, HW)
    grid = (pl.cdiv(R, r_blk), pl.cdiv(HW, hw_blk))
    kernel = functools.partial(
        _bn_stats_kernel, hw_total=HW, hw_blk=hw_blk, ragged=(HW % hw_blk != 0))
    sums, sqs = pl.pallas_call(
        kernel,
        out_shape=(jax.ShapeDtypeStruct((R, 1), jnp.float32),
                   jax.ShapeDtypeStruct((R, 1), jnp.float32)),
        grid_spec=pltpu.PrefetchScalarGridSpec(
            num_scalar_prefetch=0,
            grid=grid,
            in_specs=[pl.BlockSpec((r_blk, hw_blk), lambda r, h: (r, h))],
            out_specs=[pl.BlockSpec((r_blk, 1), lambda r, h: (r, 0)),
                       pl.BlockSpec((r_blk, 1), lambda r, h: (r, 0))],
        ),
        compiler_params=pltpu.CompilerParams(
            dimension_semantics=("parallel", "arbitrary"),
            vmem_limit_bytes=32 * 1024 * 1024,
        ),
    )(x2)
    return sums, sqs


# ----------------------------- forward pass -----------------------------

def dynamic_batchnorm2d_mixture(x_nchw, params, mix_weights, use_argmax=False, training=False):
    """Forward pass of DynamicBatchNorm2dMixture. x is NCHW, returns NCHW."""
    N, C, H, W = x_nchw.shape
    max_fd = params["max_feature_dim"]
    assert C == max_fd
    fdl = params["feature_dim_list"]
    eps = params["eps"]

    # mixture of zero-padded BN affine params over candidate widths (tiny glue)
    if max_fd == min(fdl):
        # bn.num_features == feature_dim branch in the reference -> plain bn(x)
        gamma, beta = params["weight"], params["bias"]
    else:
        gamma, beta = get_params_mixture(params, mix_weights, use_argmax=use_argmax)

    HW = H * W
    x2 = x_nchw.reshape(N * C, HW)   # free reshape (contiguous); no transpose, no pad

    # statistics
    if training:
        sums, sqs = _bn_stats_pallas(x2)                       # (N*C, 1) each
        sums = sums.reshape(N, C).sum(axis=0)                  # fold batch rows per channel
        sqs = sqs.reshape(N, C).sum(axis=0)
        count = N * HW
        mean = sums / count
        var = jnp.maximum(sqs / count - mean * mean, 0.0)      # biased var, as F.batch_norm
        # TODO(synk): the in-place EMA update of running_mean/running_var (PyTorch training
        # side effect) is not modeled; the forward output matches F.batch_norm(training=True).
    else:
        mean = params["running_mean"].astype(jnp.float32)
        var = params["running_var"].astype(jnp.float32)

    # per-channel scale/shift, replicated per batch row so the hot kernel stays 2-D
    inv_std = jax.lax.rsqrt(var + eps)
    scale = gamma.astype(jnp.float32) * inv_std                # (C,)
    shift = beta.astype(jnp.float32) - mean * scale            # (C,)
    scale_rows = jnp.broadcast_to(scale[None, :], (N, C)).reshape(N * C, 1)
    shift_rows = jnp.broadcast_to(shift[None, :], (N, C)).reshape(N * C, 1)

    y2 = _bn_apply_pallas(x2, scale_rows, shift_rows)
    return y2.reshape(N, C, H, W)


# ----------------------------- demo / self-check -----------------------------

if __name__ == "__main__":
    key = jax.random.PRNGKey(0)
    k_p, k_x, k_mix = jax.random.split(key, 3)

    feature_dim_list = [2, 3, 4]
    params = init_params(k_p, feature_dim_list)

    N, C, H, W = 2, params["max_feature_dim"], 16, 16
    x = jax.random.normal(k_x, (N, C, H, W), jnp.float32)
    mix_weights = jax.nn.softmax(
        jax.random.normal(k_mix, (len(feature_dim_list),), jnp.float32))

    def ref_bn(x, gamma, beta, mean, var, eps):
        inv = 1.0 / jnp.sqrt(var + eps)
        return ((x - mean[None, :, None, None]) * inv[None, :, None, None]
                * gamma[None, :, None, None] + beta[None, :, None, None])

    gamma_mix, beta_mix = get_params_mixture(params, mix_weights)

    # eval mode (running statistics) ------------------------------------------------
    y = dynamic_batchnorm2d_mixture(x, params, mix_weights, training=False)
    y = jax.block_until_ready(y)
    y_ref = ref_bn(x, gamma_mix, beta_mix,
                   params["running_mean"], params["running_var"], params["eps"])
    assert y.shape == (N, C, H, W)
    assert jnp.allclose(y, y_ref, atol=1e-4, rtol=1e-4), float(jnp.max(jnp.abs(y - y_ref)))

    # training mode (batch statistics via Pallas reduction kernel) -------------------
    y_t = dynamic_batchnorm2d_mixture(x, params, mix_weights, training=True)
    y_t = jax.block_until_ready(y_t)
    mean_b = jnp.mean(x, axis=(0, 2, 3))
    var_b = jnp.var(x, axis=(0, 2, 3))
    y_t_ref = ref_bn(x, gamma_mix, beta_mix, mean_b, var_b, params["eps"])
    assert jnp.allclose(y_t, y_t_ref, atol=1e-4, rtol=1e-4), float(jnp.max(jnp.abs(y_t - y_t_ref)))

    # argmax path (eager, concrete mixture weights) ----------------------------------
    y_a = dynamic_batchnorm2d_mixture(x, params, mix_weights, use_argmax=True, training=False)
    y_a = jax.block_until_ready(y_a)
    idx = int(np.argmax(np.asarray(mix_weights)))
    gamma_a, beta_a = get_active_weights_bias(params, feature_dim_list[idx])
    y_a_ref = ref_bn(x, gamma_a, beta_a,
                     params["running_mean"], params["running_var"], params["eps"])
    assert jnp.allclose(y_a, y_a_ref, atol=1e-4, rtol=1e-4)

    print("KERNEL_OK")
</pallas_src>

<mosaic_0001>
module attributes {stable_mosaic.version = 11 : i64} {
  func.func @_bn_apply_kernel(%arg0: i32, %arg1: i32, %arg2: memref<8x256xf32, #tpu.memory_space<vmem>>, %arg3: memref<8x1xf32, #tpu.memory_space<vmem>>, %arg4: memref<8x1xf32, #tpu.memory_space<vmem>>, %arg5: memref<8x256xf32, #tpu.memory_space<vmem>>) attributes {dimension_semantics = [#tpu.dimension_semantics<parallel>, #tpu.dimension_semantics<parallel>], iteration_bounds = array<i64: 1, 1>, scalar_prefetch = 0 : i64, scratch_operands = 0 : i64, tpu.core_type = #tpu.core_type<tc>, window_params = [{transform_indices = @transform_0, window_bounds = array<i64: 8, 256>}, {transform_indices = @transform_1, window_bounds = array<i64: 8, 1>}, {transform_indices = @transform_2, window_bounds = array<i64: 8, 1>}, {transform_indices = @transform_3, window_bounds = array<i64: 8, 256>}]} {
    %c0 = arith.constant 0 : index
    %c0_0 = arith.constant 0 : index
    %0 = vector.load %arg2[%c0, %c0_0] : memref<8x256xf32, #tpu.memory_space<vmem>>, vector<8x256xf32>
    %c0_1 = arith.constant 0 : index
    %c0_2 = arith.constant 0 : index
    %1 = vector.load %arg3[%c0_1, %c0_2] : memref<8x1xf32, #tpu.memory_space<vmem>>, vector<8x1xf32>
    %2 = vector.broadcast %1 : vector<8x1xf32> to vector<8x256xf32>
    %3 = arith.mulf %0, %2 : vector<8x256xf32>
    %c0_3 = arith.constant 0 : index
    %c0_4 = arith.constant 0 : index
    %4 = vector.load %arg4[%c0_3, %c0_4] : memref<8x1xf32, #tpu.memory_space<vmem>>, vector<8x1xf32>
    %5 = vector.broadcast %4 : vector<8x1xf32> to vector<8x256xf32>
    %6 = arith.addf %3, %5 : vector<8x256xf32>
    %c0_5 = arith.constant 0 : index
    %c0_6 = arith.constant 0 : index
    %7 = vector.load %arg5[%c0_5, %c0_6] : memref<8x256xf32, #tpu.memory_space<vmem>>, vector<8x256xf32>
    tpu.vector_store %arg5[%c0_5, %c0_6], %6 {strides = array<i32>} : memref<8x256xf32, #tpu.memory_space<vmem>>, vector<8x256xf32>,
    return
  }
  func.func @transform_0(%arg0: i32, %arg1: i32) -> (i32, i32) {
    %c0_i32 = arith.constant 0 : i32
    return %arg0, %arg1 : i32, i32
  }
  func.func @transform_1(%arg0: i32, %arg1: i32) -> (i32, i32) {
    %c0_i32 = arith.constant 0 : i32
    %c0_i32_0 = arith.constant 0 : i32
    return %arg0, %c0_i32 : i32, i32
  }
  func.func @transform_2(%arg0: i32, %arg1: i32) -> (i32, i32) {
    %c0_i32 = arith.constant 0 : i32
    %c0_i32_0 = arith.constant 0 : i32
    return %arg0, %c0_i32 : i32, i32
  }
  func.func @transform_3(%arg0: i32, %arg1: i32) -> (i32, i32) {
    %c0_i32 = arith.constant 0 : i32
    return %arg0, %arg1 : i32, i32
  }
}

</mosaic_0001>

<bundles_post_ra>
// kernel: tpu_custom_call.1
= control target key start
LH: loop header
LB: loop body
LE: loop exit
PB: predicated region body
PF: predicated region fallthrough
CT: control target
= control target key end

     0   :  { %s117_s0 = inlined_call_operand.vmem [shape: f32[8,256], index: 0, kind: input, shape index: {}]   ;;  %s118_s1 = inlined_call_operand.vmem [shape: f32[8,1], index: 1, kind: input, shape index: {}]   ;;  %s119_s2 = inlined_call_operand.vmem [shape: f32[8,1], index: 2, kind: input, shape index: {}]   ;;  %s120_s3 = inlined_call_operand.hbm [shape: f32[8,256], index: 3, kind: output, shape index: {}]  }
   0x1   :  { %v17_v0 = vld [vmem:[%s118_s1] sm:$0xff] }
   0x2   :  { %8 = vsyncpa [#allocation3], 0  ;;  %v80_v1 = vmov 0   ;;  %v25_v2 = vld [vmem:[%s119_s2] sm:$0xff]  ;;  %v16_v5 = vld [vmem:[%s117_s0 + $0x8] sm:$0xff]  ;;  %s81_s1 = smov [#allocation2]  }
   0x3   :  { %53 = vset.pattern.permute.xlu0 %v80_v1  ;;  %v15_v4 = vld [vmem:[%s117_s0] sm:$0xff]  ;;  %s40_s20 = sshll.u32 %s81_s1, 4  ;;  %s42_s23 = sshll.u32 %s120_s3, 4  ;;  %s41_s20 = int_to_ptr.vmem [resolvable:$true] %s40_s20  ;;  %s43_s23 = int_to_ptr.hbm [resolvable:$true] %s42_s23 }
   0x4   :  { %20 = vperm.xlu0 %53, %v17_v0  }
   0xc   :  { %28 = vperm.xlu0 %53, %v25_v2  }
  0x76   :  { %v21_v3 = vpop.permute.xlu0 %20 }
  0x77   :  { %v23_v6 = vmul.f32 %v21_v3, %v15_v4  ;;  %v24_v7 = vmul.f32 %v21_v3, %v16_v5 }
  0x7e   :  { %v29_v8 = vpop.permute.xlu0 %28 }
  0x7f   :  { %v31_v9 = vadd.f32 %v29_v8, %v23_v6  ;;  %v32_v10 = vadd.f32 %v29_v8, %v24_v7 }
  0x81   :  { %33 = vst [vmem:[#allocation2] sm:$0xff] %v31_v9 }
  0x82   :  { %34 = vst [vmem:[#allocation2 + $0x8] sm:$0xff] %v32_v10 }
  0x83   :  { %45 = dma.vmem_to_hbm [thread:$0]  %s41_s20, 256, %s43_s23, [#allocation3]  }
  0x84   :  { %78 = dma.done.wait [#allocation3], 256  }
  0x85   :  { %79 = vsyncadd [#allocation3], 4294967040 }
  0x86   :  { %50 = vsyncpa [#allocation3], 1 }

</bundles_post_ra>
